<compile_context>
chip_gen: v7x
topology: tpu7x:2x2x1
jax: 0.10.0
libtpu: 0.0.40
codegen_flags: <defaults>
</compile_context>

<pallas_src>
import functools

import jax
import jax.numpy as jnp
from jax.experimental import pallas as pl
from jax.experimental.pallas import tpu as pltpu


def _round_up(a: int, b: int) -> int:
    return (a + b - 1) // b * b


# ----------------------------------------------------------------------------
# Pallas kernel: fused Linear(3,D) -> ReLU -> Linear(D,D) on one M-tile.
# ----------------------------------------------------------------------------
def _mlp_kernel(x_ref, w1_ref, b1_ref, w2_ref, b2_ref, o_ref):
    # x_ref : (TM, 3)        w1_ref : (3, D)     b1_ref : (1, D)
    # w2_ref: (D, D) bf16    b2_ref : (1, D)     o_ref  : (TM, D)
    x = x_ref[...]
    w1 = w1_ref[...]

    # Layer 1: K=3 contraction on the VPU as three broadcast multiply-adds
    # (an MXU push would be ~2% utilized at K=3).
    h = (x[:, 0:1] * w1[0:1, :]
         + x[:, 1:2] * w1[1:2, :]
         + x[:, 2:3] * w1[2:3, :]) + b1_ref[...]
    h = jnp.maximum(h, 0.0)                                     # ReLU on VPU

    # Layer 2: DxD matmul on the MXU, bf16 inputs, f32 accumulation.
    y = jnp.dot(h.astype(jnp.bfloat16), w2_ref[...],
                preferred_element_type=jnp.float32)
    y = y + b2_ref[...]
    o_ref[...] = y.astype(o_ref.dtype)


# ----------------------------------------------------------------------------
# Wrappers
# ----------------------------------------------------------------------------
def spatial_embedding_mlp(x, w1, b1, w2, b2, *, out_dtype=None,
                          vmem_budget_bytes=16 * 1024 * 1024):
    """if_rel=False path.  x: (..., 3) -> (..., node_dim).

    w1: (3, D), b1: (D,), w2: (D, D), b2: (D,)  (PyTorch weights transposed).
    out_dtype defaults to x.dtype (f32 matches the PyTorch reference); pass
    jnp.bfloat16 to halve the dominant HBM write if downstream tolerates it.
    """
    lead_shape = x.shape[:-1]
    assert x.shape[-1] == 3, "SpatialEmbedding MLP expects xyz coordinates"
    m = 1
    for s in lead_shape:
        m *= s
    d = w1.shape[1]
    out_dtype = jnp.dtype(out_dtype if out_dtype is not None else x.dtype)

    # Parameters: w2 in bf16 for the MXU; the rest stay f32 for the VPU path.
    w1_f = w1.astype(jnp.float32)
    b1_f = b1.reshape(1, d).astype(jnp.float32)
    w2_bf = w2.astype(jnp.bfloat16)
    b2_f = b2.reshape(1, d).astype(jnp.float32)

    x_flat = x.reshape(m, 3).astype(jnp.float32)

    # Tile M: biggest tile whose double-buffered x + out blocks fit the VMEM
    # budget.  In VMEM the (TM,3) x block is lane-padded to 128 (512 B/row) and
    # the out block is lane-padded to a multiple of 128.
    lane_d = _round_up(max(d, 1), 128)
    bytes_per_row = 2 * (128 * 4) + 2 * (lane_d * out_dtype.itemsize)
    tm = max(8, (vmem_budget_bytes // bytes_per_row) // 8 * 8)
    # Keep >= 2 grid steps where possible so v7x can use both TensorCores.
    tm = min(tm, _round_up(pl.cdiv(m, 2), 8))
    tm = max(tm, 8)
    grid = (pl.cdiv(m, tm),)   # partial last block: OOB output rows are dropped

    out = pl.pallas_call(
        _mlp_kernel,
        out_shape=jax.ShapeDtypeStruct((m, d), out_dtype),
        grid=grid,
        in_specs=[
            pl.BlockSpec((tm, 3), lambda i: (i, 0)),       # streamed x tile
            pl.BlockSpec((3, d), lambda i: (0, 0)),        # VMEM-resident weights
            pl.BlockSpec((1, d), lambda i: (0, 0)),
            pl.BlockSpec((d, d), lambda i: (0, 0)),
            pl.BlockSpec((1, d), lambda i: (0, 0)),
        ],
        out_specs=pl.BlockSpec((tm, d), lambda i: (i, 0)),
        compiler_params=pltpu.CompilerParams(
            dimension_semantics=("parallel",),             # megacore-shardable
            vmem_limit_bytes=32 * 1024 * 1024,
        ),
        cost_estimate=pl.CostEstimate(
            flops=2 * m * d * (d + 3),
            transcendentals=0,
            bytes_accessed=(m * 12 + m * d * out_dtype.itemsize
                            + 4 * (3 * d + 2 * d) + 2 * d * d),
        ),
    )(x_flat, w1_f, b1_f, w2_bf, b2_f)

    return out.reshape(*lead_shape, d)


def spatial_embedding_rel(embedding_table):
    """if_rel=True path: embedding(arange(num_nodes)) == the full table.

    A pallas_call here would be an HBM->VMEM->HBM identity copy (2x HBM
    traffic), so the table is returned directly — semantically identical to the
    PyTorch forward.
    """
    return embedding_table


# ----------------------------------------------------------------------------
# Demo / self-check
# ----------------------------------------------------------------------------
if __name__ == "__main__":
    key = jax.random.PRNGKey(0)
    node_dim = 32
    num_nodes = 16
    batch = 2

    k_x, k_w1, k_b1, k_w2, k_b2, k_tbl = jax.random.split(key, 6)

    # Parameters (PyTorch Linear weight is (out, in); stored transposed (in, out)).
    w1 = jax.random.normal(k_w1, (3, node_dim), jnp.float32) * 0.1
    b1 = jax.random.normal(k_b1, (node_dim,), jnp.float32) * 0.1
    w2 = jax.random.normal(k_w2, (node_dim, node_dim), jnp.float32) * 0.1
    b2 = jax.random.normal(k_b2, (node_dim,), jnp.float32) * 0.1
    tbl = jax.random.normal(k_tbl, (num_nodes, node_dim), jnp.float32)

    # Input: (batch, num_nodes, 3) xyz coordinates (matches Linear(3, node_dim)).
    x = jax.random.normal(k_x, (batch, num_nodes, 3), jnp.float32)

    # if_rel=False path (Pallas kernel).
    out_mlp = spatial_embedding_mlp(x, w1, b1, w2, b2)
    out_mlp = jax.block_until_ready(out_mlp)

    # Pure-JAX f32 reference.  Tolerance is loosened because the layer-2 matmul
    # intentionally runs in bf16 (f32 accumulation) on the MXU.
    ref = jnp.maximum(x.reshape(-1, 3) @ w1 + b1, 0.0) @ w2 + b2
    ref = ref.reshape(batch, num_nodes, node_dim)
    assert out_mlp.shape == (batch, num_nodes, node_dim)
    assert out_mlp.dtype == x.dtype
    assert jnp.allclose(out_mlp, ref, atol=2e-2, rtol=2e-2)

    # if_rel=True path (identity on the embedding table; no copy kernel).
    out_rel = spatial_embedding_rel(tbl)
    out_rel = jax.block_until_ready(out_rel)
    assert out_rel.shape == (num_nodes, node_dim)
    assert jnp.allclose(out_rel, tbl)

    print("KERNEL_OK")
</pallas_src>

<mosaic_0001>
module attributes {stable_mosaic.version = 11 : i64} {
  func.func @_mlp_kernel(%arg0: i32, %arg1: memref<16x3xf32, #tpu.memory_space<vmem>>, %arg2: memref<3x32xf32, #tpu.memory_space<vmem>>, %arg3: memref<1x32xf32, #tpu.memory_space<vmem>>, %arg4: memref<32x32xbf16, #tpu.memory_space<vmem>>, %arg5: memref<1x32xf32, #tpu.memory_space<vmem>>, %arg6: memref<16x32xf32, #tpu.memory_space<vmem>>) attributes {dimension_semantics = [#tpu.dimension_semantics<parallel>], iteration_bounds = array<i64: 2>, scalar_prefetch = 0 : i64, scratch_operands = 0 : i64, tpu.core_type = #tpu.core_type<tc>, window_params = [{transform_indices = @transform_0, window_bounds = array<i64: 16, 3>}, {pipeline_mode = #tpu.pipeline_mode<synchronous>, transform_indices = @transform_1, window_bounds = array<i64: 3, 32>}, {pipeline_mode = #tpu.pipeline_mode<synchronous>, transform_indices = @transform_2, window_bounds = array<i64: 1, 32>}, {pipeline_mode = #tpu.pipeline_mode<synchronous>, transform_indices = @transform_3, window_bounds = array<i64: 32, 32>}, {pipeline_mode = #tpu.pipeline_mode<synchronous>, transform_indices = @transform_4, window_bounds = array<i64: 1, 32>}, {transform_indices = @transform_5, window_bounds = array<i64: 16, 32>}]} {
    %c0 = arith.constant 0 : index
    %c0_0 = arith.constant 0 : index
    %0 = vector.load %arg1[%c0, %c0_0] : memref<16x3xf32, #tpu.memory_space<vmem>>, vector<16x3xf32>
    %c0_1 = arith.constant 0 : index
    %c0_2 = arith.constant 0 : index
    %1 = vector.load %arg2[%c0_1, %c0_2] : memref<3x32xf32, #tpu.memory_space<vmem>>, vector<3x32xf32>
    %2 = vector.extract_strided_slice %0 {offsets = [0, 0], sizes = [16, 1], strides = [1, 1]} : vector<16x3xf32> to vector<16x1xf32>
    %3 = vector.extract_strided_slice %1 {offsets = [0, 0], sizes = [1, 32], strides = [1, 1]} : vector<3x32xf32> to vector<1x32xf32>
    %4 = vector.broadcast %2 : vector<16x1xf32> to vector<16x32xf32>
    %5 = vector.broadcast %3 : vector<1x32xf32> to vector<16x32xf32>
    %6 = arith.mulf %4, %5 : vector<16x32xf32>
    %7 = vector.extract_strided_slice %0 {offsets = [0, 1], sizes = [16, 1], strides = [1, 1]} : vector<16x3xf32> to vector<16x1xf32>
    %8 = vector.extract_strided_slice %1 {offsets = [1, 0], sizes = [1, 32], strides = [1, 1]} : vector<3x32xf32> to vector<1x32xf32>
    %9 = vector.broadcast %7 : vector<16x1xf32> to vector<16x32xf32>
    %10 = vector.broadcast %8 : vector<1x32xf32> to vector<16x32xf32>
    %11 = arith.mulf %9, %10 : vector<16x32xf32>
    %12 = arith.addf %6, %11 : vector<16x32xf32>
    %13 = vector.extract_strided_slice %0 {offsets = [0, 2], sizes = [16, 1], strides = [1, 1]} : vector<16x3xf32> to vector<16x1xf32>
    %14 = vector.extract_strided_slice %1 {offsets = [2, 0], sizes = [1, 32], strides = [1, 1]} : vector<3x32xf32> to vector<1x32xf32>
    %15 = vector.broadcast %13 : vector<16x1xf32> to vector<16x32xf32>
    %16 = vector.broadcast %14 : vector<1x32xf32> to vector<16x32xf32>
    %17 = arith.mulf %15, %16 : vector<16x32xf32>
    %18 = arith.addf %12, %17 : vector<16x32xf32>
    %c0_3 = arith.constant 0 : index
    %c0_4 = arith.constant 0 : index
    %19 = vector.load %arg3[%c0_3, %c0_4] : memref<1x32xf32, #tpu.memory_space<vmem>>, vector<1x32xf32>
    %20 = vector.broadcast %19 : vector<1x32xf32> to vector<16x32xf32>
    %21 = arith.addf %18, %20 : vector<16x32xf32>
    %cst = arith.constant 0.000000e+00 : f32
    %22 = vector.broadcast %cst : f32 to vector<16x32xf32>
    %23 = arith.maximumf %21, %22 : vector<16x32xf32>
    %24 = arith.truncf %23 : vector<16x32xf32> to vector<16x32xbf16>
    %c0_5 = arith.constant 0 : index
    %c0_6 = arith.constant 0 : index
    %25 = vector.load %arg4[%c0_5, %c0_6] : memref<32x32xbf16, #tpu.memory_space<vmem>>, vector<32x32xbf16>
    %cst_7 = arith.constant dense<0.000000e+00> : vector<16x32xf32>
    %26 = tpu.matmul %24, %25, %cst_7 {dimension_numbers = #tpu.dot_dimension_numbers<[1], [0], [0], [1], [0, 0, 1, 1], [], []>} : vector<16x32xbf16>, vector<32x32xbf16>, vector<16x32xf32> -> vector<16x32xf32>
    %c0_8 = arith.constant 0 : index
    %c0_9 = arith.constant 0 : index
    %27 = vector.load %arg5[%c0_8, %c0_9] : memref<1x32xf32, #tpu.memory_space<vmem>>, vector<1x32xf32>
    %28 = vector.broadcast %27 : vector<1x32xf32> to vector<16x32xf32>
    %29 = arith.addf %26, %28 : vector<16x32xf32>
    %c0_10 = arith.constant 0 : index
    %c0_11 = arith.constant 0 : index
    %30 = vector.load %arg6[%c0_10, %c0_11] : memref<16x32xf32, #tpu.memory_space<vmem>>, vector<16x32xf32>
    tpu.vector_store %arg6[%c0_10, %c0_11], %29 {strides = array<i32>} : memref<16x32xf32, #tpu.memory_space<vmem>>, vector<16x32xf32>,
    return
  }
  func.func @transform_0(%arg0: i32) -> (i32, i32) {
    %c0_i32 = arith.constant 0 : i32
    %c0_i32_0 = arith.constant 0 : i32
    return %arg0, %c0_i32 : i32, i32
  }
  func.func @transform_1(%arg0: i32) -> (i32, i32) {
    %c0_i32 = arith.constant 0 : i32
    %c0_i32_0 = arith.constant 0 : i32
    %c0_i32_1 = arith.constant 0 : i32
    return %c0_i32, %c0_i32_0 : i32, i32
  }
  func.func @transform_2(%arg0: i32) -> (i32, i32) {
    %c0_i32 = arith.constant 0 : i32
    %c0_i32_0 = arith.constant 0 : i32
    %c0_i32_1 = arith.constant 0 : i32
    return %c0_i32, %c0_i32_0 : i32, i32
  }
  func.func @transform_3(%arg0: i32) -> (i32, i32) {
    %c0_i32 = arith.constant 0 : i32
    %c0_i32_0 = arith.constant 0 : i32
    %c0_i32_1 = arith.constant 0 : i32
    return %c0_i32, %c0_i32_0 : i32, i32
  }
  func.func @transform_4(%arg0: i32) -> (i32, i32) {
    %c0_i32 = arith.constant 0 : i32
    %c0_i32_0 = arith.constant 0 : i32
    %c0_i32_1 = arith.constant 0 : i32
    return %c0_i32, %c0_i32_0 : i32, i32
  }
  func.func @transform_5(%arg0: i32) -> (i32, i32) {
    %c0_i32 = arith.constant 0 : i32
    %c0_i32_0 = arith.constant 0 : i32
    return %arg0, %c0_i32 : i32, i32
  }
}

</mosaic_0001>

<bundles_post_ra>
// kernel: tpu_custom_call.1
= control target key start
LH: loop header
LB: loop body
LE: loop exit
PB: predicated region body
PF: predicated region fallthrough
CT: control target
= control target key end

     0   :  { %10 = vsyncpa [#allocation3], 0  ;;  %s739_s0 = inlined_call_operand.vmem [shape: f32[32,3], index: 0, kind: input, shape index: {}]   ;;  %s740_s1 = inlined_call_operand.vmem [shape: f32[3,32], index: 1, kind: input, shape index: {}]   ;;  %s741_s2 = inlined_call_operand.vmem [shape: f32[1,32], index: 2, kind: input, shape index: {}]   ;;  %s742_s3 = inlined_call_operand.vmem [shape: bf16[32,32], index: 3, kind: input, shape index: {}]   ;;  %s743_s4 = inlined_call_operand.vmem [shape: f32[1,32], index: 4, kind: input, shape index: {}]   ;;  %s744_s5 = inlined_call_operand.hbm [shape: f32[32,32], index: 5, kind: output, shape index: {}]  }
   0x1   :  { %12 = vsyncpa [#allocation3 + $0x1], 0  ;;  %s619_s18 = smov 0   ;;  %s621_s19 = smov 0  }
   0x2   :  { %s623_s20 = smov 0   ;;  %s625_s21 = smov 0  }
   0x3 LB: > { %s640_s22 = sadd.s32 4294967295, %s579_s21   ;;  %s436_s23 = sadd.s32 4294967294, %s579_s21   ;;  %s579_s21 = sphi %s625_s21, %s750_s21   ;;  %s575_s20 = sphi %s623_s20, %s749_s20   ;;  %s571_s19 = sphi %s621_s19, %s748_s19   ;;  %s567_s18 = sphi %s619_s18, %s747_s18  }
   0x4   : > { %s644_s24 = sadd.s32 1, %s579_s21   ;;  %s135_s25 = sadd.s32 1, %s575_s20 }
   0x5   : > { %s132_s26 = ssub.s32 %s579_s21, %s644_s24  ;;  %p145_p0 = scmp.ne.s32.totalorder %s575_s20, %s571_s19 }
   0x6   : > { %p133_p1 = scmp.eq.s32.totalorder %s132_s26, 0  ;;  %p146_p2 = scmp.eq.s32.totalorder %s640_s22, 1 }
   0x7   : > { %p151_p3 = scmp.ne.s32.totalorder %s571_s19, %s567_s18  ;;  %p152_p4 = scmp.eq.s32.totalorder %s436_s23, 1 }
   0x8   : > { %s655_s27 = scalar_select %p133_p1, %s575_s20, %s135_s25  }
   0x9   : > { %p657_p5 = por %p146_p2, %p145_p0  ;;  %p661_p6 = por %p152_p4, %p151_p3 }
   0xa   : > { %p439_p7 = scmp.ge.s32.totalorder %s579_s21, 1  ;;  %p191_p8 = scmp.lt.s32.totalorder %s579_s21, 3 }
   0xc   : > { %p192_p9 = pnand %p439_p7, %p191_p8 }
   0xd   : > { %s441_s30 = sshll.u32 (!%p192_p9), %s640_s22, 1  ;;  %v581_v0 = vmov (!%p192_p9), 1   ;;  %v582_v1 = vmov (!%p192_p9), 0   ;;  %v583_v4 = vmov (!%p192_p9), 2   ;;  %v515_v5 = vld [vmem:[%s742_s3] sm:$0xff] (!%p192_p9)   ;;  %v584_v6 = vmov (!%p192_p9), 0.0  }
   0xe   : > { %195 = sbr.rel (%p192_p9) target bundleno = 403 (0x193), region = 40  ;;  %512 = vset.pattern.permute.xlu1 (!%p192_p9), %v581_v0  ;;  %511 = vset.pattern.permute.xlu0 (!%p192_p9), %v582_v1  ;;  %p220_p10 = scmp.lt.s32.totalorder (!%p192_p9), %s441_s30, 3  ;;  %v516_v7 = vld [vmem:[%s742_s3 + $0x8] sm:$0xff] (!%p192_p9)   ;;  %vm585_vm0 = vmmov (!%p192_p9), 0   ;;  %v240_v8 = vlaneseq (!%p192_p9)  ;;  %v229_v12 = vld [vmem:[%s740_s1] sm:$0x7] (!%p192_p9) }
   0xf   : > { %457 = vmatprep.subr.bf16.mxu0 (!%p192_p9), %v584_v6  ;;  %461 = vmatprep.mubr.msk.bf16.mxu0 (!%p192_p9), %vm585_vm0, %v584_v6  ;;  %v443_v31 = vld [vmem:[%s741_s2] ss:$0 sm:$0xff] (!%p192_p9)  ;;  %vm313_vm1 = vcmask (!%p192_p9), 261120   ;;  %s216_s23 = sand.u32 (!%p192_p9), 1, %s571_s19   ;;  %s453_s8 = sshll.u32 (!%p192_p9), %s640_s22, 8 }
  0x10   : > { %458 = vmatpush3.bf16.msra.mxu0 (!%p192_p9), %v515_v5  ;;  %v241_v9 = vshrl.u32 (!%p192_p9), %v240_v8, 7  ;;  %s440_s25 = sshll.u32 (!%p192_p9), %s216_s23, 4  ;;  %v444_v39 = vld [vmem:[%s743_s4] ss:$0 sm:$0xff] (!%p192_p9)  ;;  %s694_s11 = scalar_lea.hbm (!%p192_p9), %s744_s5, %s453_s8 }
  0x11   : > { %459 = vmatprep.subr.bf16.mxu0 (!%p192_p9), %v584_v6  ;;  %s698_s22 = scalar_lea.sflag (!%p192_p9), [#allocation3], %s216_s23  ;;  %s586_s13 = smov (!%p192_p9), [#allocation2]  }
  0x12   : > { %v256_v10 = vsub.s32 (!%p192_p9), 1, %v241_v9  ;;  %v242_v11 = vsub.s32 (!%p192_p9), 0, %v241_v9  ;;  %v272_v15 = vsub.s32 (!%p192_p9), 2, %v241_v9  ;;  %s521_s14 = sshll.u32 (!%p192_p9), %s586_s13, 4  ;;  %s522_s14 = int_to_ptr.vmem [resolvable:$false] %s521_s14 }
  0x13   : > { %s523_s15 = scalar_lea.vmem (!%p192_p9), %s522_s14, 512 }
  0x14   : > { %460 = vmatpush3.bf16.msra.mxu0 (!%p192_p9), %v516_v7  ;;  %v257_v16 = vrot.slane (!%p192_p9), %v229_v12, %v256_v10  ;;  %v243_v17 = vrot.slane (!%p192_p9), %v229_v12, %v242_v11  ;;  %v273_v20 = vrot.slane (!%p192_p9), %v229_v12, %v272_v15 }
  0x15   : > { %s752_s30 = smov (!%p220_p10, %s441_s30), 3 }
  0x16   : > { %s442_s6 = sshll.u32 %s752_s30, 3 }
  0x17   : > { %s223_s9 = scalar_lea.vmem %s739_s0, %s442_s6  ;;  %s218_s6 = scalar_lea.vmem [#allocation2], %s440_s25 }
  0x18   : > { %v227_v2 = vld [vmem:[%s223_s9] sm:$0xff]  ;;  %v228_v3 = vld [vmem:[%s223_s9 + $0x8] sm:$0xff]  ;;  %s374_s7 = sshll.u32 %s218_s6, 4  ;;  %s689_s7 = int_to_ptr.vmem [resolvable:$true] %s374_s7 }
  0x19   : > { %247 = vperm.xlu1 %512, %v227_v2   ;;  %232 = vperm.xlu0 %511, %v227_v2   ;;  %s517_s12 = scalar_lea.vmem %s689_s7, 256  ;;  %p524_p0 = scmp.lt.s32.totalorder %s689_s7, %s522_s14 }
  0x1a   : > { %p518_p11 = scmp.ne.s32.totalorder %s689_s7, %s517_s12  ;;  %p525_p1 = scmp.lt.s32.totalorder %s523_s15, %s517_s12 }
  0x1c   : > { %p519_p12 = pnand %p518_p11, %p657_p5  ;;  %p526_p2 = por %p525_p1, %p524_p0 }
  0x1d   : > { %251 = vperm.xlu1 %512, %v228_v3   ;;  %237 = vperm.xlu0 %511, %v228_v3  }
  0x1e   : > { %p520_p13 = pneg %p519_p12 }
  0x20   : > { %p527_p3 = pnand %p526_p2, %p520_p13 }
  0x21   : > { %514 = vset.pattern.permute.xlu1 %v583_v4  ;;  %513 = vset.pattern.permute.xlu0 %v583_v4 }
  0x22   : > { %267 = vperm.xlu1 %514, %v228_v3   ;;  %263 = vperm.xlu0 %513, %v227_v2  }
  0x98   : > { %v248_v13 = vpop.permute.xlu1 %247  ;;  %v233_v14 = vpop.permute.xlu0 %232 }
  0x99   : > { %v258_v21 = vmul.f32 %v257_v16, %v248_v13  ;;  %v244_v22 = vmul.f32 %v243_v17, %v233_v14 }
  0x9b   : > { %v260_v27 = vadd.f32 %v258_v21, %v244_v22 }
  0x9c   : > { %v252_v18 = vpop.permute.xlu1 %251  ;;  %v238_v19 = vpop.permute.xlu0 %237 }
  0x9d   : > { %v259_v23 = vmul.f32 %v257_v16, %v252_v18  ;;  %v245_v24 = vmul.f32 %v243_v17, %v238_v19 }
  0x9f   : > { %v261_v28 = vadd.f32 %v259_v23, %v245_v24 }
  0xa1   : > { %v268_v25 = vpop.permute.xlu1 %267  ;;  %v264_v26 = vpop.permute.xlu0 %263 }
  0xa2   : > { %v275_v29 = vmul.f32 %v273_v20, %v268_v25  ;;  %v274_v30 = vmul.f32 %v273_v20, %v264_v26 }
  0xa4   : > { %v277_v32 = vadd.f32 %v275_v29, %v261_v28  ;;  %v276_v33 = vadd.f32 %v274_v30, %v260_v27 }
  0xa6   : > { %v286_v34 = vadd.f32 %v443_v31, %v277_v32  ;;  %v285_v35 = vadd.f32 %v443_v31, %v276_v33 }
  0xa8   : > { %v288_v36 = vmax.f32 %v286_v34, 0.0  ;;  %v287_v37 = vmax.f32 %v285_v35, 0.0 }
  0xaa   : > { %v289_v38 = vpack.c.bf16 %v288_v36, %v287_v37 }
  0xac   : > { %462 = vmatmul.mubr.msk.bf16.vlgmr.msra.gmra.mrb[0].mxu0 %vm313_vm1, %v289_v38 }
 0x17f   : > { %v351_v40 = vpop.f32.mrb[0].mxu0 }
 0x180   : > { %v352_v41 = vadd.f32 %v444_v39, %v351_v40  ;;  %v463_v42 = vpop.f32.mrb[1].mxu0 }
 0x181   : > { %v354_v43 = vpop.f32.mrb[2].mxu0 }
 0x182   : > { %358 = vst.msk [vmem:[%s218_s6] sm:$0xff] %vm313_vm1, %v352_v41  ;;  %v355_v44 = vadd.f32 %v444_v39, %v354_v43  ;;  %v464_v45 = vpop.f32.mrb[3].mxu0 }
 0x184   : > { %359 = vst.msk [vmem:[%s218_s6 + $0x8] sm:$0xff] %vm313_vm1, %v355_v44 }
 0x185   : > { %530 = shalt.err (!%p527_p3)
}
 0x186   : > { %s531_s16 = scalar_lea.hbm %s694_s11, 256  ;;  %s535_s25 = scalar_lea.hbm %s744_s5, 512 }
 0x187   : > { %p532_p4 = scmp.ne.s32.totalorder %s694_s11, %s531_s16  ;;  %p536_p9 = scmp.lt.u32.totalorder %s694_s11, %s744_s5 }
 0x188   : > { %p537_p10 = scmp.lt.u32.totalorder %s535_s25, %s531_s16  ;;  %p539_p12 = scmp.lt.u32.totalorder %s531_s16, %s694_s11 }
 0x189   : > { %p533_p7 = pnand %p532_p4, %p657_p5 }
 0x18a   : > { %p538_p11 = por %p537_p10, %p536_p9 }
 0x18b   : > { %p534_p8 = pneg %p533_p7 }
 0x18c   : > { %p540_p13 = por %p539_p12, %p538_p11 }
 0x18e   : > { %p541_p0 = pnand %p540_p13, %p534_p8 }
 0x190   : > { %544 = shalt.err (!%p541_p0)
}
 0x191   : > { %s587_s6 = smov 128   ;;  %s588_s8 = smov 8  }
 0x192   : > { %465 = dma.vmem_to_hbm [thread:$0]  (%p657_p5), %s689_s7, 256, %s694_s11, %s698_s22, %s587_s6, %s587_s6, %s588_s8  }
 0x193 PF: > { %p471_p1 = scmp.ge.s32.totalorder %s579_s21, 2  ;;  %s389_s9 = sand.u32 1, %s567_s18  }
 0x194   : > { %s390_s10 = scalar_lea.sflag [#allocation3], %s389_s9 }
 0x195   : > { %p468_p2 = pnand %p471_p1, %p661_p6 }
 0x197   : > { %562 = dma.done.wait (!%p468_p2), %s390_s10, 256  }
 0x198   : > { %564 = vsyncadd (!%p468_p2), %s390_s10, 4294967040  ;;  %p15_p3 = scmp.ge.s32.totalorder %s644_s24, 4   ;;  %s747_s18 = smov %s571_s19 }
 0x199   : > { %s748_s19 = smov %s575_s20  ;;  %s749_s20 = smov %s655_s27 }
 0x19a   : > { %s750_s21 = smov %s644_s24  ;;  %17 = sbr.rel (!%p15_p3) target bundleno = 3 (0x3), region = 75 }
 0x1a1   :  { %395 = vsyncpa [#allocation3], 1 }
 0x1a2   :  { %397 = vsyncpa [#allocation3 + $0x1], 1 }

</bundles_post_ra>
